<compile_context>
chip_gen: v5e
topology: v5e:2x2
jax: 0.10.0
libtpu: 0.0.40
codegen_flags: <defaults>
</compile_context>

<pallas_src>
import functools

import jax
import jax.numpy as jnp
from jax.experimental import pallas as pl
from jax.experimental.pallas import tpu as pltpu

LN_EPS = 1e-5
BN_EPS = 1e-5


def _round_up(x, m):
    return (x + m - 1) // m * m


def _estimate_vmem_bytes(t_tile, d, k):
    """Rough per-core VMEM footprint: DMA buffers + resident weights + live f32 temps."""
    pad = k // 2
    t_halo = _round_up(t_tile + 2 * pad, 8)
    xbuf = 2 * t_halo * d * 4                 # manually double-buffered halo input
    h_scr = t_halo * d * 4                    # GLU scratch
    out_buf = 2 * t_tile * d * 4              # Pallas double-buffered output
    weights = 2 * d * d * 2 + d * d * 2 + (k + 8) * d * 4   # bf16 w1/w2 + small vectors
    live = 6 * t_halo * d * 4 + 2 * t_halo * 2 * d * 4      # x/xn/h/acc/z + y(2D) temps
    return xbuf + h_scr + out_buf + weights + live


def _fit_t_tile(t_tile, d, k, budget_bytes):
    """Shrink the T tile until the estimated VMEM footprint fits the budget."""
    t = max(8, _round_up(t_tile, 8))
    while t > 64 and _estimate_vmem_bytes(t, d, k) > budget_bytes:
        t = max(64, _round_up(t // 2, 8))
    return t


def _conv_module_kernel(
    x_hbm,      # (B, T_padded, D) zero-padded input, memory_space=pl.ANY (HBM)
    w1_ref,     # (D, 2D)  pointwise_conv1 weight^T, LayerNorm gamma folded in, bf16
    b1_ref,     # (1, 2D)  pointwise_conv1 bias, LayerNorm beta folded in
    dw_ref,     # (K, D)   depthwise weights (tap-major), BatchNorm scale folded in
    dwb_ref,    # (1, D)   depthwise bias, BatchNorm scale/shift folded in
    w2_ref,     # (D, D)   pointwise_conv2 weight^T, bf16
    b2_ref,     # (1, D)   pointwise_conv2 bias
    o_ref,      # (T_TILE, D) output tile
    xbuf,       # VMEM (2, T_HALO, D): manually double-buffered halo input window
    dma_sem,    # DMA semaphores (2,)
    h_scratch,  # VMEM (T_HALO, D) f32 scratch for the GLU output
    *,
    kernel_size: int,
    t_tile: int,
    t_halo: int,
    t_total: int,
    pad: int,
):
    b = pl.program_id(0)
    ti = pl.program_id(1)
    nt = pl.num_programs(1)
    slot = ti % 2

    def start_fetch(tile_idx, dst_slot):
        row0 = pl.multiple_of(tile_idx * t_tile, 8)
        pltpu.make_async_copy(
            x_hbm.at[b, pl.ds(row0, t_halo)],
            xbuf.at[dst_slot],
            dma_sem.at[dst_slot],
        ).start()

    # Prime the pipeline on the first T-tile of each batch row.  The T axis is
    # "arbitrary" (sequential per core), so ti == 0 is always the first step a
    # core executes for this batch row, regardless of how B is sharded.
    @pl.when(ti == 0)
    def _():
        start_fetch(0, 0)

    # Prefetch the next tile's halo window while we compute on this one.
    @pl.when(ti + 1 < nt)
    def _():
        start_fetch(ti + 1, 1 - slot)

    # Wait for the current tile's window (descriptor shapes must match start).
    pltpu.make_async_copy(
        x_hbm.at[b, pl.ds(0, t_halo)], xbuf.at[slot], dma_sem.at[slot]
    ).wait()

    x = xbuf[slot].astype(jnp.float32)                         # (T_HALO, D)
    d = x.shape[-1]

    # ---- LayerNorm over D (affine folded into w1/b1) -----------------------
    mean = jnp.mean(x, axis=-1, keepdims=True)
    xc = x - mean
    var = jnp.mean(xc * xc, axis=-1, keepdims=True)
    xn = xc * jax.lax.rsqrt(var + LN_EPS)

    # ---- pointwise_conv1 (1x1 conv == matmul, bf16 -> MXU) + GLU -----------
    y = jnp.dot(xn.astype(jnp.bfloat16), w1_ref[...],
                preferred_element_type=jnp.float32) + b1_ref[...]
    h = y[:, :d] * jax.nn.sigmoid(y[:, d:])                    # GLU, (T_HALO, D)

    # Zero rows outside the real sequence: reproduces Conv1d's zero padding of
    # the GLU output at sequence boundaries and kills halo-alignment slack rows.
    r = jax.lax.broadcasted_iota(jnp.int32, (t_halo, 1), 0)
    g = ti * t_tile - pad + r                                  # global frame index
    h = jnp.where((g >= 0) & (g < t_total), h, 0.0)

    # ---- depthwise conv along T (taps = sublane-offset loads from scratch) -
    # TODO(synk): store h_scratch as bf16 (halves tap vld bytes for large K)
    # once unaligned sublane-offset slices of packed dtypes are verified to
    # lower cleanly on all target generations; kept f32 here for robustness.
    h_scratch[...] = h
    dw = dw_ref[...]                                           # loaded once
    acc = jnp.zeros((t_tile, d), jnp.float32)
    for j in range(kernel_size):                               # K static & small
        acc = acc + h_scratch[pl.ds(j, t_tile), :] * dw[j:j + 1, :]
    acc = acc + dwb_ref[...]

    # ---- BatchNorm folded into dw/dwb; SiLU --------------------------------
    z = acc * jax.nn.sigmoid(acc)

    # ---- pointwise_conv2 (1x1 conv == matmul, bf16 -> MXU) -----------------
    out = jnp.dot(z.astype(jnp.bfloat16), w2_ref[...],
                  preferred_element_type=jnp.float32) + b2_ref[...]
    o_ref[...] = out.astype(o_ref.dtype)


def conv_module_forward(x, params, kernel_size, *, t_tile=512,
                        vmem_budget_bytes=36 * 1024 * 1024):
    """Eval-mode Conformer ConvolutionModule.  x: (B, T, D) f32 -> (B, T, D)."""
    B, T, D = x.shape
    K = kernel_size
    pad = K // 2
    assert D % 128 == 0, "lane-dense optimized path requires input_size % 128 == 0"

    t_tile = min(_round_up(t_tile, 8), _round_up(T, 8))
    t_tile = _fit_t_tile(t_tile, D, K, vmem_budget_bytes)
    nt = int(pl.cdiv(T, t_tile))
    tp = nt * t_tile
    t_halo = _round_up(t_tile + 2 * pad, 8)
    t_padded = (nt - 1) * t_tile + t_halo        # every DMA window stays in bounds

    # Single host-side zero pad (Conv1d left padding + tail/alignment slack on
    # the right).  No per-tile halo duplication: the kernel DMAs each
    # overlapping (t_halo, D) window straight out of this array.
    x_pad = jnp.pad(x, ((0, 0), (pad, t_padded - pad - T), (0, 0)))

    kernel = functools.partial(
        _conv_module_kernel,
        kernel_size=K, t_tile=t_tile, t_halo=t_halo, t_total=T, pad=pad)

    # Weights / per-channel params: whole-array resident in VMEM (no per-step DMA).
    def resident():
        return pl.BlockSpec(memory_space=pltpu.MemorySpace.VMEM)

    vmem_limit = min(48 * 1024 * 1024,
                     max(32 * 1024 * 1024,
                         int(1.5 * _estimate_vmem_bytes(t_tile, D, K))))

    out = pl.pallas_call(
        kernel,
        out_shape=jax.ShapeDtypeStruct((B, tp, D), x.dtype),
        grid_spec=pltpu.PrefetchScalarGridSpec(
            num_scalar_prefetch=0,
            grid=(B, nt),
            in_specs=[
                pl.BlockSpec(memory_space=pl.ANY),   # padded input (manual halo DMA)
                resident(),    # w1 (LN-folded, bf16)
                resident(),    # b1 (LN-folded)
                resident(),    # depthwise weights (BN-folded)
                resident(),    # depthwise bias (BN-folded)
                resident(),    # w2 (bf16)
                resident(),    # b2
            ],
            out_specs=pl.BlockSpec((None, t_tile, D), lambda b, ti: (b, ti, 0)),
            scratch_shapes=[
                pltpu.VMEM((2, t_halo, D), x.dtype),    # double-buffered halo input
                pltpu.SemaphoreType.DMA((2,)),
                pltpu.VMEM((t_halo, D), jnp.float32),   # GLU scratch
            ],
        ),
        compiler_params=pltpu.CompilerParams(
            dimension_semantics=("parallel", "arbitrary"),
            vmem_limit_bytes=vmem_limit,
        ),
    )(
        x_pad,
        params["w1_f"], params["b1_f"],
        params["dw_f"], params["dwb_f"],
        params["w2_t"], params["b2"],
    )
    if tp != T:
        out = out[:, :T, :]
    return out


def make_params(key, input_size, kernel_size):
    """Raw parameters mirroring the PyTorch module (eval mode), f32."""
    D, K = input_size, kernel_size
    ks = jax.random.split(key, 12)
    s = 0.1
    return {
        "ln_gamma": 1.0 + s * jax.random.normal(ks[0], (D,), jnp.float32),
        "ln_beta": s * jax.random.normal(ks[1], (D,), jnp.float32),
        "w1": s * jax.random.normal(ks[2], (2 * D, D), jnp.float32),   # Conv1d (out,in,1)
        "b1": s * jax.random.normal(ks[3], (2 * D,), jnp.float32),
        "dw": s * jax.random.normal(ks[4], (D, K), jnp.float32),       # Conv1d (D,1,K)
        "dw_b": s * jax.random.normal(ks[5], (D,), jnp.float32),
        "bn_gamma": 1.0 + s * jax.random.normal(ks[6], (D,), jnp.float32),
        "bn_beta": s * jax.random.normal(ks[7], (D,), jnp.float32),
        "bn_mean": s * jax.random.normal(ks[8], (D,), jnp.float32),
        "bn_var": 1.0 + 0.5 * jax.random.uniform(ks[9], (D,), jnp.float32),
        "w2": s * jax.random.normal(ks[10], (D, D), jnp.float32),      # Conv1d (out,in,1)
        "b2": s * jax.random.normal(ks[11], (D,), jnp.float32),
    }


def fold_params(raw):
    """Fold LayerNorm affine into pointwise_conv1 and eval-mode BatchNorm into
    the depthwise conv; cast the two matmul weights to bf16 for the MXU."""
    D = raw["w2"].shape[0]

    w1_t = jnp.transpose(raw["w1"])                              # (D, 2D)
    w1_f = (raw["ln_gamma"][:, None] * w1_t).astype(jnp.bfloat16)
    b1_f = raw["b1"] + raw["ln_beta"] @ w1_t                     # (2D,)

    bn_scale = raw["bn_gamma"] * jax.lax.rsqrt(raw["bn_var"] + BN_EPS)
    bn_shift = raw["bn_beta"] - raw["bn_mean"] * bn_scale
    dw_f = jnp.transpose(raw["dw"]) * bn_scale[None, :]          # (K, D)
    dwb_f = raw["dw_b"] * bn_scale + bn_shift

    return {
        "w1_f": w1_f,
        "b1_f": b1_f.reshape(1, 2 * D),
        "dw_f": dw_f,
        "dwb_f": dwb_f.reshape(1, D),
        "w2_t": jnp.transpose(raw["w2"]).astype(jnp.bfloat16),
        "b2": raw["b2"].reshape(1, D),
    }


def _reference_forward(x, raw, kernel_size):
    """Pure-JAX f32 reference mirroring the PyTorch module (eval, unfolded params)."""
    D = x.shape[-1]
    T = x.shape[1]
    mean = jnp.mean(x, axis=-1, keepdims=True)
    var = jnp.mean((x - mean) ** 2, axis=-1, keepdims=True)
    xn = (x - mean) * jax.lax.rsqrt(var + LN_EPS) * raw["ln_gamma"] + raw["ln_beta"]

    y = jnp.einsum("btd,ed->bte", xn, raw["w1"]) + raw["b1"]
    h = y[..., :D] * jax.nn.sigmoid(y[..., D:])

    pad = kernel_size // 2
    hp = jnp.pad(h, ((0, 0), (pad, pad), (0, 0)))
    acc = jnp.zeros_like(h)
    for j in range(kernel_size):
        acc = acc + hp[:, j:j + T, :] * raw["dw"][:, j][None, None, :]
    acc = acc + raw["dw_b"]

    z = (acc - raw["bn_mean"]) * jax.lax.rsqrt(raw["bn_var"] + BN_EPS) \
        * raw["bn_gamma"] + raw["bn_beta"]
    z = z * jax.nn.sigmoid(z)
    return jnp.einsum("btd,ed->bte", z, raw["w2"]) + raw["b2"]


if __name__ == "__main__":
    key = jax.random.PRNGKey(0)
    configs = [
        # (B, T, D, K, t_tile): small shapes; second config exercises the
        # ragged tail (T not a multiple of the tile) and the boundary mask.
        (2, 64, 128, 5, 16),
        (2, 20, 128, 5, 8),
    ]
    for (B, T, D, K, tt) in configs:
        key, k_x, k_p = jax.random.split(key, 3)
        x = jax.random.normal(k_x, (B, T, D), jnp.float32)
        raw = make_params(k_p, D, K)
        params = fold_params(raw)

        out = conv_module_forward(x, params, K, t_tile=tt)
        out = jax.block_until_ready(out)

        ref = _reference_forward(x, raw, K)
        assert out.shape == (B, T, D)
        err = float(jnp.max(jnp.abs(out - ref)))
        assert jnp.allclose(out, ref, atol=2e-2, rtol=2e-2), (
            f"mismatch vs. f32 reference (B={B}, T={T}, K={K}): max abs diff {err}")

    print("KERNEL_OK")
</pallas_src>

<mosaic_0001>
module attributes {stable_mosaic.version = 11 : i64} {
  func.func @_conv_module_kernel(%arg0: i32, %arg1: i32, %arg2: memref<2x72x128xf32, #tpu.memory_space<any>>, %arg3: memref<128x256xbf16, #tpu.memory_space<vmem>>, %arg4: memref<1x256xf32, #tpu.memory_space<vmem>>, %arg5: memref<5x128xf32, #tpu.memory_space<vmem>>, %arg6: memref<1x128xf32, #tpu.memory_space<vmem>>, %arg7: memref<128x128xbf16, #tpu.memory_space<vmem>>, %arg8: memref<1x128xf32, #tpu.memory_space<vmem>>, %arg9: memref<1x16x128xf32, #tpu.memory_space<vmem>>, %arg10: memref<2x24x128xf32, #tpu.memory_space<vmem>>, %arg11: memref<2x!tpu.dma_semaphore, #tpu.memory_space<semaphore_mem>>, %arg12: memref<24x128xf32, #tpu.memory_space<vmem>>) attributes {dimension_semantics = [#tpu.dimension_semantics<parallel>, #tpu.dimension_semantics<arbitrary>], iteration_bounds = array<i64: 2, 4>, scalar_prefetch = 0 : i64, scratch_operands = 3 : i64, tpu.core_type = #tpu.core_type<tc>, window_params = [{}, {pipeline_mode = #tpu.pipeline_mode<synchronous>, transform_indices = @transform_1, window_bounds = array<i64: 128, 256>}, {pipeline_mode = #tpu.pipeline_mode<synchronous>, transform_indices = @transform_2, window_bounds = array<i64: 1, 256>}, {pipeline_mode = #tpu.pipeline_mode<synchronous>, transform_indices = @transform_3, window_bounds = array<i64: 5, 128>}, {pipeline_mode = #tpu.pipeline_mode<synchronous>, transform_indices = @transform_4, window_bounds = array<i64: 1, 128>}, {pipeline_mode = #tpu.pipeline_mode<synchronous>, transform_indices = @transform_5, window_bounds = array<i64: 128, 128>}, {pipeline_mode = #tpu.pipeline_mode<synchronous>, transform_indices = @transform_6, window_bounds = array<i64: 1, 128>}, {transform_indices = @transform_7, window_bounds = array<i64: 1, 16, 128>}]} {
    %c2_i32 = arith.constant 2 : i32
    %c0_i32 = arith.constant 0 : i32
    %0 = arith.cmpi eq, %c2_i32, %c0_i32 : i32
    %c1_i32 = arith.constant 1 : i32
    %1 = arith.select %0, %c1_i32, %c2_i32 : i32
    %2 = arith.remsi %arg1, %1 : i32
    %c0_i32_0 = arith.constant 0 : i32
    %3 = arith.cmpi ne, %2, %c0_i32_0 : i32
    %c0_i32_1 = arith.constant 0 : i32
    %4 = arith.cmpi slt, %2, %c0_i32_1 : i32
    %c0_i32_2 = arith.constant 0 : i32
    %5 = arith.cmpi slt, %1, %c0_i32_2 : i32
    %6 = arith.xori %4, %5 : i1
    %7 = arith.andi %6, %3 : i1
    %8 = arith.addi %2, %1 : i32
    %9 = arith.select %7, %8, %2 : i32
    %c0_i32_3 = arith.constant 0 : i32
    %10 = arith.cmpi eq, %arg1, %c0_i32_3 : i32
    %11 = arith.extui %10 : i1 to i32
    %c0_i32_4 = arith.constant 0 : i32
    %12 = arith.cmpi ne, %11, %c0_i32_4 : i32
    scf.if %12 {
      %c0_i32_47 = arith.constant 0 : i32
      %116 = tpu.assume_multiple %c0_i32_47, 8 : i32
      %c0_i32_48 = arith.constant 0 : i32
      %c0_i32_49 = arith.constant 0 : i32
      %c0_i32_50 = arith.constant 0 : i32
      %117 = tpu.memref_slice %arg2[%arg0, %116, %c0_i32_50] : memref<2x72x128xf32, #tpu.memory_space<any>> -> memref<1x24x128xf32, #tpu.memory_space<any>>
      %118 = tpu.memref_squeeze %117 : memref<1x24x128xf32, #tpu.memory_space<any>> -> memref<24x128xf32, #tpu.memory_space<any>>
      %c0_i32_51 = arith.constant 0 : i32
      %c0_i32_52 = arith.constant 0 : i32
      %119 = tpu.memref_slice %arg10[%c0_i32_48, %c0_i32_51, %c0_i32_52] : memref<2x24x128xf32, #tpu.memory_space<vmem>> -> memref<1x24x128xf32, #tpu.memory_space<vmem>>
      %120 = tpu.memref_squeeze %119 : memref<1x24x128xf32, #tpu.memory_space<vmem>> -> memref<24x128xf32, #tpu.memory_space<vmem>>
      %121 = tpu.memref_slice %arg11[%c0_i32_49] : memref<2x!tpu.dma_semaphore, #tpu.memory_space<semaphore_mem>> -> memref<1x!tpu.dma_semaphore, #tpu.memory_space<semaphore_mem>>
      %122 = tpu.memref_squeeze %121 : memref<1x!tpu.dma_semaphore, #tpu.memory_space<semaphore_mem>> -> memref<!tpu.dma_semaphore, #tpu.memory_space<semaphore_mem>>
      tpu.enqueue_dma source(%118 : memref<24x128xf32, #tpu.memory_space<any>>) target(%120 : memref<24x128xf32, #tpu.memory_space<vmem>>) target_semaphore(%122 : memref<!tpu.dma_semaphore, #tpu.memory_space<semaphore_mem>>)
    } else {
    }
    %c1_i32_5 = arith.constant 1 : i32
    %13 = arith.addi %arg1, %c1_i32_5 : i32
    %c4_i32 = arith.constant 4 : i32
    %14 = arith.cmpi slt, %13, %c4_i32 : i32
    %15 = arith.extui %14 : i1 to i32
    %c0_i32_6 = arith.constant 0 : i32
    %16 = arith.cmpi ne, %15, %c0_i32_6 : i32
    scf.if %16 {
      %c1_i32_47 = arith.constant 1 : i32
      %116 = arith.addi %arg1, %c1_i32_47 : i32
      %c1_i32_48 = arith.constant 1 : i32
      %117 = arith.subi %c1_i32_48, %9 : i32
      %c16_i32_49 = arith.constant 16 : i32
      %118 = arith.muli %116, %c16_i32_49 : i32
      %119 = tpu.assume_multiple %118, 8 : i32
      %c0_i32_50 = arith.constant 0 : i32
      %120 = tpu.memref_slice %arg2[%arg0, %119, %c0_i32_50] : memref<2x72x128xf32, #tpu.memory_space<any>> -> memref<1x24x128xf32, #tpu.memory_space<any>>
      %121 = tpu.memref_squeeze %120 : memref<1x24x128xf32, #tpu.memory_space<any>> -> memref<24x128xf32, #tpu.memory_space<any>>
      %c0_i32_51 = arith.constant 0 : i32
      %c0_i32_52 = arith.constant 0 : i32
      %122 = tpu.memref_slice %arg10[%117, %c0_i32_51, %c0_i32_52] : memref<2x24x128xf32, #tpu.memory_space<vmem>> -> memref<1x24x128xf32, #tpu.memory_space<vmem>>
      %123 = tpu.memref_squeeze %122 : memref<1x24x128xf32, #tpu.memory_space<vmem>> -> memref<24x128xf32, #tpu.memory_space<vmem>>
      %124 = tpu.memref_slice %arg11[%117] : memref<2x!tpu.dma_semaphore, #tpu.memory_space<semaphore_mem>> -> memref<1x!tpu.dma_semaphore, #tpu.memory_space<semaphore_mem>>
      %125 = tpu.memref_squeeze %124 : memref<1x!tpu.dma_semaphore, #tpu.memory_space<semaphore_mem>> -> memref<!tpu.dma_semaphore, #tpu.memory_space<semaphore_mem>>
      tpu.enqueue_dma source(%121 : memref<24x128xf32, #tpu.memory_space<any>>) target(%123 : memref<24x128xf32, #tpu.memory_space<vmem>>) target_semaphore(%125 : memref<!tpu.dma_semaphore, #tpu.memory_space<semaphore_mem>>)
    } else {
    }
    %c0_i32_7 = arith.constant 0 : i32
    %c0_i32_8 = arith.constant 0 : i32
    %17 = tpu.memref_slice %arg2[%arg0, %c0_i32_7, %c0_i32_8] : memref<2x72x128xf32, #tpu.memory_space<any>> -> memref<1x24x128xf32, #tpu.memory_space<any>>
    %18 = tpu.memref_squeeze %17 : memref<1x24x128xf32, #tpu.memory_space<any>> -> memref<24x128xf32, #tpu.memory_space<any>>
    %c0_i32_9 = arith.constant 0 : i32
    %c0_i32_10 = arith.constant 0 : i32
    %19 = tpu.memref_slice %arg10[%9, %c0_i32_9, %c0_i32_10] : memref<2x24x128xf32, #tpu.memory_space<vmem>> -> memref<1x24x128xf32, #tpu.memory_space<vmem>>
    %20 = tpu.memref_squeeze %19 : memref<1x24x128xf32, #tpu.memory_space<vmem>> -> memref<24x128xf32, #tpu.memory_space<vmem>>
    %21 = tpu.memref_slice %arg11[%9] : memref<2x!tpu.dma_semaphore, #tpu.memory_space<semaphore_mem>> -> memref<1x!tpu.dma_semaphore, #tpu.memory_space<semaphore_mem>>
    %22 = tpu.memref_squeeze %21 : memref<1x!tpu.dma_semaphore, #tpu.memory_space<semaphore_mem>> -> memref<!tpu.dma_semaphore, #tpu.memory_space<semaphore_mem>>
    tpu.wait_dma2 semaphore(%22 : memref<!tpu.dma_semaphore, #tpu.memory_space<semaphore_mem>>) src(%18 : memref<24x128xf32, #tpu.memory_space<any>>) dst(%20 : memref<24x128xf32, #tpu.memory_space<vmem>>)
    %23 = arith.index_cast %9 : i32 to index
    %c0 = arith.constant 0 : index
    %c0_11 = arith.constant 0 : index
    %24 = vector.load %arg10[%23, %c0, %c0_11] : memref<2x24x128xf32, #tpu.memory_space<vmem>>, vector<1x24x128xf32>
    %25 = vector.shape_cast %24 : vector<1x24x128xf32> to vector<24x128xf32>
    %cst = arith.constant dense<0.000000e+00> : vector<24xf32>
    %26 = vector.multi_reduction <add>, %25, %cst [1] : vector<24x128xf32> to vector<24xf32>
    %27 = vector.shape_cast %26 : vector<24xf32> to vector<24x1xf32>
    %cst_12 = arith.constant 1.280000e+02 : f32
    %28 = vector.broadcast %cst_12 : f32 to vector<24x1xf32>
    %29 = arith.divf %27, %28 : vector<24x1xf32>
    %30 = vector.broadcast %29 : vector<24x1xf32> to vector<24x128xf32>
    %31 = arith.subf %25, %30 : vector<24x128xf32>
    %32 = arith.mulf %31, %31 : vector<24x128xf32>
    %cst_13 = arith.constant dense<0.000000e+00> : vector<24xf32>
    %33 = vector.multi_reduction <add>, %32, %cst_13 [1] : vector<24x128xf32> to vector<24xf32>
    %34 = vector.shape_cast %33 : vector<24xf32> to vector<24x1xf32>
    %cst_14 = arith.constant 1.280000e+02 : f32
    %35 = vector.broadcast %cst_14 : f32 to vector<24x1xf32>
    %36 = arith.divf %34, %35 : vector<24x1xf32>
    %cst_15 = arith.constant 9.99999974E-6 : f32
    %37 = vector.broadcast %cst_15 : f32 to vector<24x1xf32>
    %38 = arith.addf %36, %37 : vector<24x1xf32>
    %39 = math.rsqrt %38 : vector<24x1xf32>
    %40 = vector.broadcast %39 : vector<24x1xf32> to vector<24x128xf32>
    %41 = arith.mulf %31, %40 : vector<24x128xf32>
    %42 = arith.truncf %41 : vector<24x128xf32> to vector<24x128xbf16>
    %c0_16 = arith.constant 0 : index
    %c0_17 = arith.constant 0 : index
    %43 = vector.load %arg3[%c0_16, %c0_17] : memref<128x256xbf16, #tpu.memory_space<vmem>>, vector<128x256xbf16>
    %cst_18 = arith.constant dense<0.000000e+00> : vector<24x256xf32>
    %44 = tpu.matmul %42, %43, %cst_18 {dimension_numbers = #tpu.dot_dimension_numbers<[1], [0], [0], [1], [0, 0, 1, 1], [], []>} : vector<24x128xbf16>, vector<128x256xbf16>, vector<24x256xf32> -> vector<24x256xf32>
    %c0_19 = arith.constant 0 : index
    %c0_20 = arith.constant 0 : index
    %45 = vector.load %arg4[%c0_19, %c0_20] : memref<1x256xf32, #tpu.memory_space<vmem>>, vector<1x256xf32>
    %46 = vector.broadcast %45 : vector<1x256xf32> to vector<24x256xf32>
    %47 = arith.addf %44, %46 : vector<24x256xf32>
    %48 = vector.extract_strided_slice %47 {offsets = [0, 0], sizes = [24, 128], strides = [1, 1]} : vector<24x256xf32> to vector<24x128xf32>
    %49 = vector.extract_strided_slice %47 {offsets = [0, 128], sizes = [24, 128], strides = [1, 1]} : vector<24x256xf32> to vector<24x128xf32>
    %50 = arith.negf %49 : vector<24x128xf32>
    %51 = math.exp %50 : vector<24x128xf32>
    %cst_21 = arith.constant 1.000000e+00 : f32
    %52 = vector.broadcast %cst_21 : f32 to vector<24x128xf32>
    %53 = arith.addf %52, %51 : vector<24x128xf32>
    %54 = arith.divf %52, %53 : vector<24x128xf32>
    %55 = arith.mulf %48, %54 : vector<24x128xf32>
    %56 = tpu.iota {dimensions = array<i32: 0>} : vector<24x1xi32>
    %c16_i32 = arith.constant 16 : i32
    %57 = arith.muli %arg1, %c16_i32 : i32
    %c2_i32_22 = arith.constant 2 : i32
    %58 = arith.subi %57, %c2_i32_22 : i32
    %59 = vector.broadcast %58 : i32 to vector<24x1xi32>
    %60 = arith.addi %59, %56 : vector<24x1xi32>
    %c0_i32_23 = arith.constant 0 : i32
    %61 = vector.broadcast %c0_i32_23 : i32 to vector<24x1xi32>
    %62 = arith.cmpi sge, %60, %61 : vector<24x1xi32>
    %c64_i32 = arith.constant 64 : i32
    %63 = vector.broadcast %c64_i32 : i32 to vector<24x1xi32>
    %64 = arith.cmpi slt, %60, %63 : vector<24x1xi32>
    %65 = arith.andi %62, %64 : vector<24x1xi1>
    %cst_24 = arith.constant 0.000000e+00 : f32
    %66 = vector.shape_cast %65 : vector<24x1xi1> to vector<24x1xi1>
    %67 = vector.broadcast %66 : vector<24x1xi1> to vector<24x128xi1>
    %68 = vector.broadcast %cst_24 : f32 to vector<24x128xf32>
    %69 = arith.select %67, %55, %68 : vector<24x128xi1>, vector<24x128xf32>
    %c0_25 = arith.constant 0 : index
    %c0_26 = arith.constant 0 : index
    %70 = vector.load %arg12[%c0_25, %c0_26] : memref<24x128xf32, #tpu.memory_space<vmem>>, vector<24x128xf32>
    tpu.vector_store %arg12[%c0_25, %c0_26], %69 {strides = array<i32>} : memref<24x128xf32, #tpu.memory_space<vmem>>, vector<24x128xf32>,
    %c0_27 = arith.constant 0 : index
    %c0_28 = arith.constant 0 : index
    %71 = vector.load %arg5[%c0_27, %c0_28] : memref<5x128xf32, #tpu.memory_space<vmem>>, vector<5x128xf32>
    %cst_29 = arith.constant 0.000000e+00 : f32
    %72 = vector.broadcast %cst_29 : f32 to vector<16x128xf32>
    %c0_30 = arith.constant 0 : index
    %c0_31 = arith.constant 0 : index
    %73 = vector.load %arg12[%c0_30, %c0_31] : memref<24x128xf32, #tpu.memory_space<vmem>>, vector<16x128xf32>
    %74 = vector.extract_strided_slice %71 {offsets = [0, 0], sizes = [1, 128], strides = [1, 1]} : vector<5x128xf32> to vector<1x128xf32>
    %75 = vector.broadcast %74 : vector<1x128xf32> to vector<16x128xf32>
    %76 = arith.mulf %73, %75 : vector<16x128xf32>
    %77 = arith.addf %72, %76 : vector<16x128xf32>
    %c1 = arith.constant 1 : index
    %c0_32 = arith.constant 0 : index
    %78 = vector.load %arg12[%c1, %c0_32] : memref<24x128xf32, #tpu.memory_space<vmem>>, vector<16x128xf32>
    %79 = vector.extract_strided_slice %71 {offsets = [1, 0], sizes = [1, 128], strides = [1, 1]} : vector<5x128xf32> to vector<1x128xf32>
    %80 = vector.broadcast %79 : vector<1x128xf32> to vector<16x128xf32>
    %81 = arith.mulf %78, %80 : vector<16x128xf32>
    %82 = arith.addf %77, %81 : vector<16x128xf32>
    %c2 = arith.constant 2 : index
    %c0_33 = arith.constant 0 : index
    %83 = vector.load %arg12[%c2, %c0_33] : memref<24x128xf32, #tpu.memory_space<vmem>>, vector<16x128xf32>
    %84 = vector.extract_strided_slice %71 {offsets = [2, 0], sizes = [1, 128], strides = [1, 1]} : vector<5x128xf32> to vector<1x128xf32>
    %85 = vector.broadcast %84 : vector<1x128xf32> to vector<16x128xf32>
    %86 = arith.mulf %83, %85 : vector<16x128xf32>
    %87 = arith.addf %82, %86 : vector<16x128xf32>
    %c3 = arith.constant 3 : index
    %c0_34 = arith.constant 0 : index
    %88 = vector.load %arg12[%c3, %c0_34] : memref<24x128xf32, #tpu.memory_space<vmem>>, vector<16x128xf32>
    %89 = vector.extract_strided_slice %71 {offsets = [3, 0], sizes = [1, 128], strides = [1, 1]} : vector<5x128xf32> to vector<1x128xf32>
    %90 = vector.broadcast %89 : vector<1x128xf32> to vector<16x128xf32>
    %91 = arith.mulf %88, %90 : vector<16x128xf32>
    %92 = arith.addf %87, %91 : vector<16x128xf32>
    %c4 = arith.constant 4 : index
    %c0_35 = arith.constant 0 : index
    %93 = vector.load %arg12[%c4, %c0_35] : memref<24x128xf32, #tpu.memory_space<vmem>>, vector<16x128xf32>
    %94 = vector.extract_strided_slice %71 {offsets = [4, 0], sizes = [1, 128], strides = [1, 1]} : vector<5x128xf32> to vector<1x128xf32>
    %95 = vector.broadcast %94 : vector<1x128xf32> to vector<16x128xf32>
    %96 = arith.mulf %93, %95 : vector<16x128xf32>
    %97 = arith.addf %92, %96 : vector<16x128xf32>
    %c0_36 = arith.constant 0 : index
    %c0_37 = arith.constant 0 : index
    %98 = vector.load %arg6[%c0_36, %c0_37] : memref<1x128xf32, #tpu.memory_space<vmem>>, vector<1x128xf32>
    %99 = vector.broadcast %98 : vector<1x128xf32> to vector<16x128xf32>
    %100 = arith.addf %97, %99 : vector<16x128xf32>
    %101 = arith.negf %100 : vector<16x128xf32>
    %102 = math.exp %101 : vector<16x128xf32>
    %cst_38 = arith.constant 1.000000e+00 : f32
    %103 = vector.broadcast %cst_38 : f32 to vector<16x128xf32>
    %104 = arith.addf %103, %102 : vector<16x128xf32>
    %105 = arith.divf %103, %104 : vector<16x128xf32>
    %106 = arith.mulf %100, %105 : vector<16x128xf32>
    %107 = arith.truncf %106 : vector<16x128xf32> to vector<16x128xbf16>
    %c0_39 = arith.constant 0 : index
    %c0_40 = arith.constant 0 : index
    %108 = vector.load %arg7[%c0_39, %c0_40] : memref<128x128xbf16, #tpu.memory_space<vmem>>, vector<128x128xbf16>
    %cst_41 = arith.constant dense<0.000000e+00> : vector<16x128xf32>
    %109 = tpu.matmul %107, %108, %cst_41 {dimension_numbers = #tpu.dot_dimension_numbers<[1], [0], [0], [1], [0, 0, 1, 1], [], []>} : vector<16x128xbf16>, vector<128x128xbf16>, vector<16x128xf32> -> vector<16x128xf32>
    %c0_42 = arith.constant 0 : index
    %c0_43 = arith.constant 0 : index
    %110 = vector.load %arg8[%c0_42, %c0_43] : memref<1x128xf32, #tpu.memory_space<vmem>>, vector<1x128xf32>
    %111 = vector.broadcast %110 : vector<1x128xf32> to vector<16x128xf32>
    %112 = arith.addf %109, %111 : vector<16x128xf32>
    %c0_44 = arith.constant 0 : index
    %c0_45 = arith.constant 0 : index
    %c0_46 = arith.constant 0 : index
    %113 = vector.load %arg9[%c0_44, %c0_45, %c0_46] : memref<1x16x128xf32, #tpu.memory_space<vmem>>, vector<1x16x128xf32>
    %114 = vector.shape_cast %113 : vector<1x16x128xf32> to vector<16x128xf32>
    %115 = vector.shape_cast %112 : vector<16x128xf32> to vector<1x16x128xf32>
    tpu.vector_store %arg9[%c0_44, %c0_45, %c0_46], %115 {strides = array<i32>} : memref<1x16x128xf32, #tpu.memory_space<vmem>>, vector<1x16x128xf32>,
    return
  }
  func.func @transform_1(%arg0: i32, %arg1: i32) -> (i32, i32) {
    %c0_i32 = arith.constant 0 : i32
    %c0_i32_0 = arith.constant 0 : i32
    %c0_i32_1 = arith.constant 0 : i32
    return %c0_i32, %c0_i32_0 : i32, i32
  }
  func.func @transform_2(%arg0: i32, %arg1: i32) -> (i32, i32) {
    %c0_i32 = arith.constant 0 : i32
    %c0_i32_0 = arith.constant 0 : i32
    %c0_i32_1 = arith.constant 0 : i32
    return %c0_i32, %c0_i32_0 : i32, i32
  }
  func.func @transform_3(%arg0: i32, %arg1: i32) -> (i32, i32) {
    %c0_i32 = arith.constant 0 : i32
    %c0_i32_0 = arith.constant 0 : i32
    %c0_i32_1 = arith.constant 0 : i32
    return %c0_i32, %c0_i32_0 : i32, i32
  }
  func.func @transform_4(%arg0: i32, %arg1: i32) -> (i32, i32) {
    %c0_i32 = arith.constant 0 : i32
    %c0_i32_0 = arith.constant 0 : i32
    %c0_i32_1 = arith.constant 0 : i32
    return %c0_i32, %c0_i32_0 : i32, i32
  }
  func.func @transform_5(%arg0: i32, %arg1: i32) -> (i32, i32) {
    %c0_i32 = arith.constant 0 : i32
    %c0_i32_0 = arith.constant 0 : i32
    %c0_i32_1 = arith.constant 0 : i32
    return %c0_i32, %c0_i32_0 : i32, i32
  }
  func.func @transform_6(%arg0: i32, %arg1: i32) -> (i32, i32) {
    %c0_i32 = arith.constant 0 : i32
    %c0_i32_0 = arith.constant 0 : i32
    %c0_i32_1 = arith.constant 0 : i32
    return %c0_i32, %c0_i32_0 : i32, i32
  }
  func.func @transform_7(%arg0: i32, %arg1: i32) -> (i32, i32, i32) {
    %c0_i32 = arith.constant 0 : i32
    %c0_i32_0 = arith.constant 0 : i32
    return %arg0, %arg1, %c0_i32 : i32, i32, i32
  }
}

</mosaic_0001>

<bundles_post_ra>
// kernel: tpu_custom_call.1
= control target key start
LH: loop header
LB: loop body
LE: loop exit
PB: predicated region body
PF: predicated region fallthrough
CT: control target
= control target key end

     0   :  { %s1927_s0 = inlined_call_operand.hbm [shape: f32[2,72,128], index: 0, kind: input, shape index: {}]   ;;  %s1928_s1 = inlined_call_operand.hbm [shape: bf16[128,256], index: 1, kind: input, shape index: {}]   ;;  %s1929_s2 = inlined_call_operand.hbm [shape: f32[1,256], index: 2, kind: input, shape index: {}]   ;;  %s1930_s3 = inlined_call_operand.hbm [shape: f32[5,128], index: 3, kind: input, shape index: {}]   ;;  %s1931_s4 = inlined_call_operand.vmem [shape: f32[1,128], index: 4, kind: input, shape index: {}]   ;;  %s1932_s5 = inlined_call_operand.hbm [shape: bf16[128,128], index: 5, kind: input, shape index: {}]   ;;  %s1933_s6 = inlined_call_operand.vmem [shape: f32[1,128], index: 6, kind: input, shape index: {}]   ;;  %s1934_s7 = inlined_call_operand.hbm [shape: f32[2,64,128], index: 7, kind: output, shape index: {}]  }
   0x1   :  { %1941 = sst [smem:[#allocation30_spill]] %s1928_s1 }
   0x2   :  { %1942 = sst [smem:[#allocation31_spill]] %s1929_s2 }
   0x3   :  { %12 = vsyncpa [#allocation6], 0 }
   0x4   :  { %13 = vsyncpa [#allocation9], 0 }
   0x5   :  { %14 = vsyncpa [#allocation12], 0 }
   0x6   :  { %15 = vsyncpa [#allocation7], 0 }
   0x7   :  { %17 = vsyncpa [#allocation7 + $0x1], 0  ;;  %s1646_s24 = smov 0   ;;  %s1648_s25 = smov 0  }
   0x8   :  { %s1650_s26 = smov 0   ;;  %s1652_s27 = smov 0  }
   0x9   :  { %s1654_s28 = smov 0   ;;  %s1656_s29 = smov 0  }
   0xa   :  { %s1658_s30 = smov 0   ;;  %s1660_s8 = smov 0  }
   0xb LB: > { %1943 = sst [smem:[#allocation25_spill]] %s1584_s29  ;;  %s990_s9 = sadd.s32 4294967295, %s1592_s8   ;;  %s1592_s8 = sphi %s1660_s8, %s23_s8   ;;  %s1588_s30 = sphi %s1658_s30, %s1964_s30   ;;  %s1584_s29 = sphi %s1656_s29, %s1963_s29   ;;  %s1580_s28 = sphi %s1654_s28, %s1962_s28   ;;  %s1576_s27 = sphi %s1652_s27, %s1961_s27   ;;  %s1572_s26 = sphi %s1650_s26, %s1967_s26   ;;  %s1568_s25 = sphi %s1648_s25, %s1966_s25   ;;  %s1564_s24 = sphi %s1646_s24, %s1965_s24  }
   0xc   : > { %1944 = sst [smem:[#allocation26_spill]] %s1588_s30  ;;  %s991_s10 = sadd.s32 4294967294, %s1592_s8  }
   0xd   : > { %s32_s11 = sadd.s32 1, %s1584_s29  ;;  %s35_s12 = sadd.s32 1, %s1588_s30 }
   0xe   : > { %p33_p0 = scmp.ge.s32.totalorder %s32_s11, 4  ;;  %s170_s13 = sadd.s32 1, %s1572_s26 }
   0xf   : > { %p180_p1 = scmp.ne.s32.totalorder %s1572_s26, %s1568_s25  ;;  %p181_p2 = scmp.eq.s32.totalorder %s990_s9, 7 }
  0x10   : > { %s1969_s11 = smov (%p33_p0, %s32_s11), 0  ;;  %s1971_s12 = smov (!%p33_p0, %s35_s12), %s1588_s30 }
  0x11   : > { %1945 = sst [smem:[#allocation27_spill]] %s1969_s11  ;;  %s166_s14 = ssub.s32 %s1584_s29, %s1969_s11 }
  0x12   : > { %p1698_p3 = por %p181_p2, %p180_p1  ;;  %p37_p4 = scmp.ge.s32.totalorder %s1971_s12, 2 }
  0x13   : > { %p186_p5 = scmp.ne.s32.totalorder %s1568_s25, %s1564_s24  ;;  %p187_p6 = scmp.eq.s32.totalorder %s991_s10, 7 }
  0x14   : > { %p992_p7 = scmp.ge.s32.totalorder %s1592_s8, 1  ;;  %s1973_s12 = smov (%p37_p4, %s1971_s12), 0 }
  0x15   : > { %1947 = sst [smem:[#allocation28_spill]] %s1973_s12  ;;  %p1707_p8 = por %p187_p6, %p186_p5 }
  0x16   : > { %p194_p9 = scmp.lt.s32.totalorder %s1592_s8, 9  ;;  %s165_s17 = ssub.s32 %s1588_s30, %s1973_s12 }
  0x17   : > { %s1948_s16 = scalar_select %p1707_p8, 1, 0 }
  0x18   : > { %s167_s18 = sor.u32 %s166_s14, %s165_s17  ;;  %p1714_p10 = pnand %p992_p7, %p194_p9 }
  0x19   : > { %p168_p11 = scmp.eq.s32.totalorder %s167_s18, 0  ;;  %p1718_p12 = scmp.eq.s32.totalorder %s990_s9, 0 }
  0x1a   : > { %p1174_p13 = pneg %p1714_p10  ;;  %s1951_s2 = sld [smem:[#allocation31_spill]] }
  0x1b   : > { %s1728_s10 = scalar_select %p168_p11, %s1572_s26, %s170_s13  }
  0x1c   : > { %p1732_p0 = pnand %p1718_p12, %p1174_p13  ;;  %s1594_s9 = smov [#allocation8]  }
  0x1d   : > { %1952 = sst [smem:[#allocation29_spill]] %s1728_s10  ;;  %s222_s17 = sshll.u32 %s1594_s9, 4  ;;  %s223_s17 = int_to_ptr.vmem [resolvable:$true] %s222_s17 }
  0x1e   : > { %s1954_s1 = sld [smem:[#allocation30_spill]]  ;;  %s1595_s13 = smov [#allocation5]  }
  0x1f   : > { %s207_s22 = sshll.u32 %s1595_s13, 4  ;;  %s232_s30 = sshll.u32 %s1930_s3, 4  ;;  %s208_s22 = int_to_ptr.vmem [resolvable:$true] %s207_s22  ;;  %s233_s30 = int_to_ptr.hbm [resolvable:$true] %s232_s30 }
  0x20   : > { %s220_s23 = sshll.u32 %s1951_s2, 4  ;;  %s1596_s29 = smov 128   ;;  %s221_s23 = int_to_ptr.hbm [resolvable:$true] %s220_s23 }
  0x21   : > { %1180 = dma.hbm_to_vmem [thread:$0]  (!%p1732_p0), %s221_s23, 32, %s223_s17, [#allocation9]  }
  0x22   : > { %s1597_s10 = smov 8   ;;  %s1598_s23 = smov [#allocation10]  }
  0x23   : > { %s234_s9 = sshll.u32 %s1598_s23, 4  ;;  %s246_s18 = sshll.u32 %s1932_s5, 4  ;;  %s235_s9 = int_to_ptr.vmem [resolvable:$true] %s234_s9  ;;  %s247_s18 = int_to_ptr.hbm [resolvable:$true] %s246_s18 }
  0x24   : > { %s205_s21 = sshll.u32 %s1954_s1, 4  ;;  %s1599_s13 = smov [#allocation11]   ;;  %s206_s21 = int_to_ptr.hbm [resolvable:$true] %s205_s21 }
  0x25   : > { %1177 = dma.hbm_to_vmem [thread:$0]  (!%p1732_p0), %s206_s21, 2048, %s208_s22, [#allocation6], %s1596_s29, %s1596_s29, %s1597_s10  }
  0x26   : > { %1183 = dma.hbm_to_vmem [thread:$0]  (!%p1732_p0), %s233_s30, 128, %s235_s9, [#allocation9]  }
  0x27   : > { %s248_s1 = sshll.u32 %s1599_s13, 4  ;;  %s1600_s2 = smov 64   ;;  %s249_s1 = int_to_ptr.vmem [resolvable:$true] %s248_s1 }
  0x28   : > { %s1601_s11 = smov 4   ;;  %267 = sbr.rel (%p1714_p10) target bundleno = 747 (0x2eb), region = 44 }
  0x29   : > { %1186 = dma.hbm_to_vmem [thread:$0]  (!%p1732_p0), %s247_s18, 1024, %s249_s1, [#allocation12], %s1600_s2, %s1600_s2, %s1601_s11  }
  0x2d   : > { %1545 = dma.done.wait (%p1718_p12), [#allocation6], 2048  }
  0x2e   : > { %1547 = vsyncadd (%p1718_p12), [#allocation6], 4294965248 }
  0x2f   : > { %1549 = dma.done.wait (%p1718_p12), [#allocation9], 160  }
  0x30   : > { %1551 = vsyncadd (%p1718_p12), [#allocation9], 4294967136 }
  0x31   : > { %1553 = dma.done.wait (%p1718_p12), [#allocation12], 1024  }
  0x32   : > { %1555 = vsyncadd (%p1718_p12), [#allocation12], 4294966272  ;;  %s1939_s1 = sand.u32 1, %s1568_s25   ;;  %p1199_p1 = scmp.eq.s32.totalorder %s1576_s27, 0 }
  0x33   : > { %s1770_s29 = sshll.u32 %s1939_s1, 4  ;;  %s325_s30 = smul.u32 72, %s1580_s28 }
  0x34   : > { %s1940_s19 = sshll.u32 %s1576_s27, 4  ;;  %s1602_s20 = smov [#allocation2]  }
  0x35   : > { %s327_s21 = scalar_lea.hbm %s1927_s0, %s325_s30  ;;  %s337_s22 = sshll.u32 %s1602_s20, 4  ;;  %s338_s22 = int_to_ptr.vmem [resolvable:$true] %s337_s22 }
  0x36   : > { %s335_s23 = sshll.u32 %s327_s21, 4  ;;  %s908_s9 = sadd.s32 %s1940_s19, %s325_s30  ;;  %s336_s23 = int_to_ptr.hbm [resolvable:$true] %s335_s23 }
  0x37   : > { %s1428_s17 = sshra.s32 %s336_s23, 4  ;;  %s1434_s2 = scalar_lea.hbm %s1927_s0, 144  ;;  %s1429_s17 = int_to_ptr.hbm [resolvable:$true] %s1428_s17 }
  0x38   : > { %s1430_s12 = scalar_lea.hbm %s1429_s17, 24  ;;  %p1435_p6 = scmp.lt.s32.totalorder %s1429_s17, %s1927_s0 }
  0x39   : > { %p1431_p2 = scmp.ne.s32.totalorder %s1429_s17, %s1430_s12  ;;  %p1436_p7 = scmp.lt.s32.totalorder %s1434_s2, %s1430_s12 }
  0x3b   : > { %p1432_p4 = pnand %p1431_p2, %p1199_p1  ;;  %p1437_p9 = por %p1436_p7, %p1435_p6 }
  0x3d   : > { %p1433_p5 = pneg %p1432_p4 }
  0x3f   : > { %p1438_p10 = pnand %p1437_p9, %p1433_p5 }
  0x41   : > { %1441 = shalt.err (!%p1438_p10)  }
  0x42   : > { %1169 = dma.hbm_to_vmem [thread:$0]  (%p1199_p1), %s336_s23, 384, %s338_s22, [#allocation3] }
  0x43   : > { %s909_s13 = scalar_lea.hbm %s1927_s0, %s908_s9  ;;  %p309_p11 = scmp.lt.s32.totalorder %s1576_s27, 0 }
  0x44   : > { %s310_s17 = ssub.s32 0, %s1576_s27  ;;  %s341_s10 = sadd.s32 1, %s1576_s27 }
  0x45   : > { %s1003_s11 = smin.u32 %s1576_s27, %s310_s17  ;;  %s910_s12 = scalar_lea.hbm %s909_s13, 16 }
  0x46   : > { %s312_s14 = sand.u32 1, %s1003_s11   ;;  %s361_s19 = sshll.u32 %s910_s12, 4  ;;  %s1810_s19 = int_to_ptr.hbm [resolvable:$true] %s361_s19 }
  0x47   : > { %s313_s21 = ssub.s32 0, %s312_s14  ;;  %p1804_p13 = scmp.lt.s32.totalorder %s341_s10, 4 }
  0x48   : > { %s1975_s21 = smov (!%p309_p11, %s313_s21), %s312_s14  ;;  %s1456_s11 = sshra.s32 %s1810_s19, 4  ;;  %s1457_s11 = int_to_ptr.hbm [resolvable:$true] %s1456_s11 }
  0x49   : > { %p1005_p12 = scmp.lt.s32.totalorder %s1975_s21, 0  ;;  %s319_s1 = sadd.s32 2, %s1975_s21 }
  0x4a   : > { %s1458_s14 = scalar_lea.hbm %s1457_s11, 24  ;;  %p1463_p4 = scmp.lt.s32.totalorder %s1457_s11, %s1927_s0 }
  0x4b   : > { %s1977_s1 = smov (!%p1005_p12, %s319_s1), %s1975_s21  ;;  %p1459_p0 = scmp.ne.s32.totalorder %s1457_s11, %s1458_s14 }
  0x4c   : > { %s346_s23 = ssub.s32 1, %s1977_s1  ;;  %p1464_p5 = scmp.lt.s32.totalorder %s1434_s2, %s1458_s14 }
  0x4d   : > { %s351_s30 = smul.u32 24, %s346_s23  ;;  %s353_s17 = scalar_lea.sflag [#allocation3], %s346_s23 }
  0x4e   : > { %p1460_p1 = pnand %p1459_p0, %p1804_p13  ;;  %p1465_p6 = por %p1464_p5, %p1463_p4 }
  0x4f   : > { %s352_s18 = scalar_lea.vmem [#allocation2], %s351_s30 }
  0x50   : > { %s363_s13 = sshll.u32 %s352_s18, 4  ;;  %p1461_p2 = pneg %p1460_p1  ;;  %s364_s13 = int_to_ptr.vmem [resolvable:$true] %s363_s13 }
  0x52   : > { %p1466_p7 = pnand %p1465_p6, %p1461_p2 }
  0x54   : > { %1469 = shalt.err (!%p1466_p7)  }
  0x55   : > { %s1470_s23 = sshra.s32 %s364_s13, 4  ;;  %s1476_s18 = scalar_lea.vmem %s1602_s20, 48  ;;  %s1471_s23 = int_to_ptr.vmem [resolvable:$true] %s1470_s23 }
  0x56   : > { %s1472_s30 = scalar_lea.vmem %s1471_s23, 24  ;;  %p1477_p12 = scmp.lt.s32.totalorder %s1471_s23, [#allocation2] }
  0x57   : > { %p1473_p9 = scmp.ne.s32.totalorder %s1471_s23, %s1472_s30  ;;  %p1478_p0 = scmp.lt.s32.totalorder %s1476_s18, %s1472_s30 }
  0x59   : > { %p1474_p10 = pnand %p1473_p9, %p1804_p13  ;;  %p1479_p1 = por %p1478_p0, %p1477_p12 }
  0x5b   : > { %p1475_p11 = pneg %p1474_p10 }
  0x5d   : > { %p1480_p8 = pnand %p1479_p1, %p1475_p11 }
  0x5f   : > { %1483 = shalt.err (!%p1480_p8)  }
  0x60   : > { %1171 = dma.hbm_to_vmem [thread:$0]  (%p1804_p13), %s1810_s19, 384, %s364_s13, %s353_s17 }
  0x61   : > { %s1829_s2 = scalar_lea.vmem [#allocation13], %s1770_s29  ;;  %s1956_s9 = smul.u32 24, %s1977_s1 }
  0x62   : > { %s369_s14 = scalar_lea.sflag [#allocation3], %s1977_s1 }
  0x63   : > { %s368_s11 = scalar_lea.vmem [#allocation2], %s1956_s9 }
  0x64   : > { %1556 = dma.done.wait %s369_s14, 384 }
  0x65   : > { %1557 = vsyncadd %s369_s14, 4294966912  ;;  %v373_v0 = vld [vmem:[%s368_s11] sm:$0xff]  ;;  %v375_v1 = vld [vmem:[%s368_s11 + $0x10] sm:$0xff]  ;;  %v1603_v3 = vmov 128.0   ;;  %s1957_s1 = sshll.u32 %s1576_s27, 4  ;;  %s1113_s22 = sshll.u32 %s1576_s27, 1 }
  0x66   : > { %376 = vadd.xlane.f32.xlu0 %v373_v0  ;;  %380 = vadd.xlane.f32.xlu1 %v375_v1  ;;  %v374_v2 = vld [vmem:[%s368_s11 + $0x8] sm:$0xff]  ;;  %1280 = vrcp.f32 %v1603_v3  ;;  %v1067_v22 = vld [vmem:[#allocation5 + $0x70] sm:$0xf]  ;;  %v1134_v24 = vld [vmem:[#allocation5 + $0x74] sm:$0xf]  ;;  %s1077_s29 = sadd.s32 4294967294, %s1957_s1 }
  0x67   : > { %v1135_v23 = vld [vmem:[#allocation5 + $0x74] sm:$0xf0]  ;;  %v1069_v26 = vld [vmem:[#allocation5 + $0x78] sm:$0xf0]  ;;  %v1059_v28 = vld [vmem:[#allocation5 + $0x60] sm:$0xf] }
  0x68   : > { %v1068_v25 = vor.u32 %v1135_v23, %v1067_v22  ;;  %v1072_v27 = vor.u32 %v1134_v24, %v1069_v26  ;;  %v1133_v29 = vld [vmem:[#allocation5 + $0x64] sm:$0xf0]  ;;  %v1132_v30 = vld [vmem:[#allocation5 + $0x64] sm:$0xf]  ;;  %v1061_v32 = vld [vmem:[#allocation5 + $0x68] sm:$0xf0] }
  0x69   : > { %v1060_v31 = vor.u32 %v1133_v29, %v1059_v28  ;;  %v1064_v33 = vor.u32 %v1132_v30, %v1061_v32  ;;  %v1051_v34 = vld [vmem:[#allocation5 + $0x50] sm:$0xf]  ;;  %v1131_v35 = vld [vmem:[#allocation5 + $0x54] sm:$0xf0]  ;;  %v1130_v36 = vld [vmem:[#allocation5 + $0x54] sm:$0xf] }
  0x6a   : > { %547 = vmatpush.bf16.msra.mxu0 %v1068_v25  ;;  %1144 = vmatpush.bf16.msra.mxu3 %v1068_v25  ;;  %v1052_v37 = vor.u32 %v1131_v35, %v1051_v34  ;;  %v1053_v38 = vld [vmem:[#allocation5 + $0x58] sm:$0xf0]  ;;  %v1043_v40 = vld [vmem:[#allocation5 + $0x40] sm:$0xf]  ;;  %v1129_v41 = vld [vmem:[#allocation5 + $0x44] sm:$0xf0] }
  0x6b   : > { %565 = vmatpush.bf16.msra.mxu1 %v1072_v27  ;;  %v1056_v39 = vor.u32 %v1130_v36, %v1053_v38  ;;  %v1128_v42 = vld [vmem:[#allocation5 + $0x44] sm:$0xf]  ;;  %v1044_v43 = vor.u32 %v1129_v41, %v1043_v40  ;;  %v1045_v44 = vld [vmem:[#allocation5 + $0x48] sm:$0xf0]  ;;  %v1035_v46 = vld [vmem:[#allocation5 + $0x30] sm:$0xf] }
  0x6c   : > { %v1281_v4 = vpop.eup %1280  ;;  %v1048_v45 = vor.u32 %v1128_v42, %v1045_v44  ;;  %v1127_v47 = vld [vmem:[#allocation5 + $0x34] sm:$0xf0]  ;;  %v1126_v48 = vld [vmem:[#allocation5 + $0x34] sm:$0xf]  ;;  %v1037_v50 = vld [vmem:[#allocation5 + $0x38] sm:$0xf0] }
  0x6d   : > { %v383_v5 = vmul.f32 128.0, %v1281_v4  ;;  %vm387_vm0 = vweird.f32 %v1281_v4  ;;  %v1036_v49 = vor.u32 %v1127_v47, %v1035_v46  ;;  %v1040_v51 = vor.u32 %v1126_v48, %v1037_v50  ;;  %v1027_v52 = vld [vmem:[#allocation5 + $0x20] sm:$0xf]  ;;  %v1125_v53 = vld [vmem:[#allocation5 + $0x24] sm:$0xf0]  ;;  %s1114_s13 = sshll.u32 %s1580_s28, 3 }
  0x6e   : > { %378 = vadd.xlane.f32.xlu0 %v374_v2  ;;  %548 = vmatpush.bf16.msra.mxu0 %v1060_v31  ;;  %v1124_v54 = vld [vmem:[#allocation5 + $0x24] sm:$0xf]  ;;  %v1028_v55 = vor.u32 %v1125_v53, %v1027_v52  ;;  %v1029_v56 = vld [vmem:[#allocation5 + $0x28] sm:$0xf0]  ;;  %v1019_v58 = vld [vmem:[#allocation5 + $0x10] sm:$0xf]  ;;  %s853_s17 = sadd.s32 %s1114_s13, %s1113_s22 }
  0x6f   : > { %v384_v6 = vsub.f32 1.0, %v383_v5  ;;  %1145 = vmatpush.bf16.msra.mxu3 %v1060_v31  ;;  %566 = vmatpush.bf16.msra.mxu1 %v1064_v33  ;;  %v1032_v57 = vor.u32 %v1124_v54, %v1029_v56  ;;  %v1123_v59 = vld [vmem:[#allocation5 + $0x14] sm:$0xf0]  ;;  %v1122_v60 = vld [vmem:[#allocation5 + $0x14] sm:$0xf]  ;;  %s1115_s21 = sshll.u32 %s853_s17, 3 }
  0x70   : > { %v1020_v61 = vor.u32 %v1123_v59, %v1019_v58  ;;  %v1021_v62 = vld [vmem:[#allocation5 + $0x18] sm:$0xf0]  ;;  %v461_v44 = vld [vmem:[#allocation8] sm:$0x3]  ;;  %s855_s18 = scalar_lea.hbm %s1934_s7, %s1115_s21  ;;  %s856_s9 = sshll.u32 %s1829_s2, 4  ;;  %s857_s9 = int_to_ptr.vmem [resolvable:$true] %s856_s9 }
  0x71   : > { %v385_v7 = vmul.f32 %v1281_v4, %v384_v6  ;;  %v1024_v63 = vor.u32 %v1122_v60, %v1021_v62  ;;  %v1861_v60 = vstv %s1077_s29  ;;  %v1142_v62 = vld [vmem:[#allocation11 + $0x30] sm:$0xff]  ;;  %s858_s11 = sshll.u32 %s855_s18, 4  ;;  %s1958_s27 = sand.u32 1, %s1568_s25   ;;  %s859_s11 = int_to_ptr.hbm [resolvable:$true] %s858_s11 }
  0x72   : > { %549 = vmatpush.bf16.msra.mxu0 %v1052_v37  ;;  %s842_s28 = scalar_lea.sflag [#allocation7], %s1958_s27  ;;  %s1498_s14 = sshra.s32 %s859_s11, 4  ;;  %s1499_s14 = int_to_ptr.hbm [resolvable:$true] %s1498_s14 }
  0x73   : > { %v386_v8 = vadd.f32 %v1281_v4, %v385_v7  ;;  %1146 = vmatpush.bf16.msra.mxu3 %v1052_v37  ;;  %567 = vmatpush.bf16.msra.mxu1 %v1056_v39  ;;  %s1500_s1 = scalar_lea.hbm %s1499_s14, 16  ;;  %s1504_s20 = scalar_lea.hbm %s1934_s7, 128 }
  0x74   : > { %p1501_p8 = scmp.ne.s32.totalorder %s1499_s14, %s1500_s1  ;;  %p1505_p4 = scmp.lt.s32.totalorder %s1499_s14, %s1934_s7 }
  0x75   : > { %v1834_v9 = vsel %vm387_vm0, %v1281_v4, %v386_v8  ;;  %v1013_v4 = vld [vmem:[#allocation5 + $0x8] sm:$0xf0]  ;;  %p1506_p5 = scmp.lt.s32.totalorder %s1504_s20, %s1500_s1 }
  0x76   : > { %550 = vmatpush.bf16.msra.mxu0 %v1044_v43  ;;  %p1502_p13 = pnand %p1501_p8, %p1698_p3 }
  0x77   : > { %1147 = vmatpush.bf16.msra.mxu3 %v1044_v43  ;;  %568 = vmatpush.bf16.msra.mxu1 %v1048_v45  ;;  %p1507_p6 = por %p1506_p5, %p1505_p4 }
  0x78   : > { %p1503_p2 = pneg %p1502_p13 }
  0x7a   : > { %551 = vmatpush.bf16.msra.mxu0 %v1036_v49  ;;  %p1508_p7 = pnand %p1507_p6, %p1503_p2 }
  0x7b   : > { %1148 = vmatpush.bf16.msra.mxu3 %v1036_v49  ;;  %569 = vmatpush.bf16.msra.mxu1 %v1040_v51 }
  0x7e   : > { %552 = vmatpush.bf16.msra.mxu0 %v1028_v55 }
  0x7f   : > { %1149 = vmatpush.bf16.msra.mxu3 %v1028_v55  ;;  %570 = vmatpush.bf16.msra.mxu1 %v1032_v57  ;;  %v1143_v55 = vld [vmem:[#allocation11 + $0x38] sm:$0xff] }
  0x80   : > { %825 = vmatpush.bf16.msra.mxu2 %v1143_v55 }
  0x82   : > { %553 = vmatpush.bf16.msra.mxu0 %v1020_v61 }
  0x83   : > { %1150 = vmatpush.bf16.msra.mxu3 %v1020_v61  ;;  %571 = vmatpush.bf16.msra.mxu1 %v1024_v63 }
  0x84   : > { %826 = vmatpush.bf16.msra.mxu2 %v1142_v62 }
  0xd9   : > { %v377_v10 = vpop.xlane.xlu0 %376  ;;  %v381_v15 = vpop.xlane.xlu1 %380 }
  0xda   : > { %v389_v11 = vmul.f32 %v1834_v9, %v377_v10  ;;  %v391_v18 = vmul.f32 %v1834_v9, %v381_v15 }
  0xdc   : > { %v1837_v12 = vsub.f32 %v373_v0, %v389_v11  ;;  %v1847_v20 = vsub.f32 %v375_v1, %v391_v18  ;;  %v1011_v0 = vld [vmem:[#allocation5] sm:$0xf]  ;;  %v1121_v1 = vld [vmem:[#allocation5 + $0x4] sm:$0xf0] }
  0xdd   : > { %v1012_v3 = vor.u32 %v1121_v1, %v1011_v0 }
  0xde   : > { %v395_v13 = vmul.f32 %v1837_v12, %v1837_v12  ;;  %v397_v21 = vmul.f32 %v1847_v20, %v1847_v20 }
  0xdf   : > { %554 = vmatpush.bf16.msra.mxu0 %v1012_v3  ;;  %1151 = vmatpush.bf16.msra.mxu3 %v1012_v3 }
  0xe0   : > { %398 = vadd.xlane.f32.xlu1 %v395_v13 }
  0xe1   : > { %v379_v14 = vpop.xlane.xlu0 %378 }
  0xe2   : > { %v390_v16 = vmul.f32 %v1834_v9, %v379_v14 }
  0xe4   : > { %v1842_v17 = vsub.f32 %v374_v2, %v390_v16  ;;  %v1120_v2 = vld [vmem:[#allocation5 + $0x4] sm:$0xf] }
  0xe5   : > { %v1016_v5 = vor.u32 %v1120_v2, %v1013_v4 }
  0xe6   : > { %v396_v19 = vmul.f32 %v1842_v17, %v1842_v17 }
  0xe7   : > { %572 = vmatpush.bf16.msra.mxu1 %v1016_v5 }
  0xe8   : > { %400 = vadd.xlane.f32.xlu2 %v396_v19 }
  0xf0   : > { %402 = vadd.xlane.f32.xlu2 %v397_v21 }
 0x153   : > { %v399_v6 = vpop.xlane.xlu1 %398 }
 0x154   : > { %v404_v7 = vmul.f32 %v399_v6, %v1834_v9  ;;  %v1141_v6 = vld [vmem:[#allocation11 + $0x28] sm:$0xff] }
 0x155   : > { %827 = vmatpush.bf16.msra.mxu2 %v1141_v6 }
 0x156   : > { %v407_v8 = vadd.f32 1e-05, %v404_v7  ;;  %v1864_v7 = vperm.slane %v461_v44, 0 }
 0x158   : > { %1282 = vrsqrt.f32 %v407_v8  ;;  %vm416_vm2 = vweird.f32 %v407_v8 }
 0x15b   : > { %v401_v10 = vpop.xlane.xlu2 %400 }
 0x15c   : > { %v405_v11 = vmul.f32 %v401_v10, %v1834_v9 }
 0x15e   : > { %v1283_v13 = vpop.eup %1282  ;;  %v408_v14 = vadd.f32 1e-05, %v405_v11 }
 0x15f   : > { %v411_v15 = vmul.f32 %v1283_v13, %v407_v8  ;;  %vm417_vm1 = vweird.f32 %v1283_v13 }
 0x160   : > { %1284 = vrsqrt.f32 %v408_v14  ;;  %vm418_vm4 = vmor %vm416_vm2, %vm417_vm1  ;;  %vm426_vm5 = vweird.f32 %v408_v14 }
 0x161   : > { %v412_v16 = vmul.f32 %v1283_v13, %v411_v15 }
 0x163   : > { %v413_v18 = vmul.f32 0.5, %v412_v16  ;;  %v403_v19 = vpop.xlane.xlu2 %402 }
 0x164   : > { %v406_v21 = vmul.f32 %v403_v19, %v1834_v9  ;;  %v1140_v19 = vld [vmem:[#allocation11 + $0x20] sm:$0xff] }
 0x165   : > { %v414_v24 = vsub.f32 1.5, %v413_v18  ;;  %828 = vmatpush.bf16.msra.mxu2 %v1140_v19 }
 0x166   : > { %v1285_v22 = vpop.eup %1284  ;;  %v409_v23 = vadd.f32 1e-05, %v406_v21 }
 0x167   : > { %v421_v25 = vmul.f32 %v1285_v22, %v408_v14  ;;  %v415_v28 = vmul.f32 %v1283_v13, %v414_v24  ;;  %vm427_vm3 = vweird.f32 %v1285_v22 }
 0x168   : > { %1286 = vrsqrt.f32 %v409_v23  ;;  %vm428_vm6 = vmor %vm426_vm5, %vm427_vm3  ;;  %vm436_vm7 = vweird.f32 %v409_v23 }
 0x169   : > { %v422_v26 = vmul.f32 %v1285_v22, %v421_v25  ;;  %v419_v32 = vsel %vm418_vm4, %v1283_v13, %v415_v28 }
 0x16a   : > { %v440_v35 = vmul.f32 %v419_v32, %v1837_v12  ;;  %v464_v12 = vperm.slane %v461_v44, 1 }
 0x16b   : > { %v423_v27 = vmul.f32 0.5, %v422_v26 }
 0x16d   : > { %v424_v29 = vsub.f32 1.5, %v423_v27 }
 0x16e   : > { %v1287_v30 = vpop.eup %1286 }
 0x16f   : > { %v431_v31 = vmul.f32 %v1287_v30, %v409_v23  ;;  %v425_v33 = vmul.f32 %v1285_v22, %v424_v29  ;;  %vm437_vm8 = vweird.f32 %v1287_v30  ;;  %v1139_v29 = vld [vmem:[#allocation11 + $0x18] sm:$0xff] }
 0x170   : > { %vm438_vm9 = vmor %vm436_vm7, %vm437_vm8  ;;  %829 = vmatpush.bf16.msra.mxu2 %v1139_v29 }
 0x171   : > { %v432_v9 = vmul.f32 %v1287_v30, %v431_v31  ;;  %v429_v34 = vsel %vm428_vm6, %v1285_v22, %v425_v33 }
 0x172   : > { %v441_v36 = vmul.f32 %v429_v34, %v1842_v17 }
 0x173   : > { %v433_v37 = vmul.f32 0.5, %v432_v9 }
 0x174   : > { %v443_v38 = vpack.c.bf16 %v441_v36, %v440_v35 }
 0x175   : > { %v434_v39 = vsub.f32 1.5, %v433_v37  ;;  %v1138_v37 = vld [vmem:[#allocation11 + $0x10] sm:$0xff] }
 0x176   : > { %555 = vmatmul.bf16.vlgmr.msra.gmra.mxu0 %v443_v38  ;;  %573 = vmatmul.bf16.vlgmr.msra.gmra.mxu1 %v443_v38 }
 0x177   : > { %v435_v40 = vmul.f32 %v1287_v30, %v434_v39  ;;  %830 = vmatpush.bf16.msra.mxu2 %v1138_v37 }
 0x179   : > { %v439_v41 = vsel %vm438_vm9, %v1287_v30, %v435_v40 }
 0x17a   : > { %v442_v42 = vmul.f32 %v439_v41, %v1847_v20  ;;  %v643_v20 = vlaneseq }
 0x17c   : > { %v444_v43 = vpack.c.bf16 %v442_v42, %v442_v42  ;;  %v644_v57 = vshrl.u32 %v643_v20, 7 }
 0x17e   : > { %560 = vmatmul.bf16.vlgmr.msra.gmra.mxu3 %v444_v43  ;;  %v650_v2 = vadd.s32 %v1861_v60, %v644_v57  ;;  %v645_v11 = vadd.s32 8, %v644_v57  ;;  %v646_v34 = vadd.s32 16, %v644_v57 }
 0x180   : > { %vm653_vm12 = vcmp.ge.s32.totalorder %v650_v2, 0  ;;  %vm656_vm13 = vcmp.lt.s32.totalorder %v650_v2, 64  ;;  %v651_v25 = vadd.s32 %v1861_v60, %v645_v11  ;;  %v652_v44 = vadd.s32 %v1861_v60, %v646_v34 }
 0x181   : > { %vm659_vm0 = vmand %vm653_vm12, %vm656_vm13 }
 0x182   : > { %vm654_vm2 = vcmp.ge.s32.totalorder %v651_v25, 0  ;;  %vm657_vm4 = vcmp.lt.s32.totalorder %v651_v25, 64 }
 0x183   : > { %vm660_vm7 = vmand %vm654_vm2, %vm657_vm4 }
 0x186   : > { %578 = vmatmul.bf16.gmra.mxu1 %v444_v43 }
 0x1f3   : > { %v574_v45 = vpop.f32.mrf.mxu1  ;;  %v556_v3 = vpop.f32.mrf.mxu0 }
 0x1f4   : > { %v575_v17 = vadd.f32 %v574_v45, %v464_v12  ;;  %v557_v21 = vadd.f32 %v556_v3, %v1864_v7  ;;  %v1137_v45 = vld [vmem:[#allocation11 + $0x8] sm:$0xff] }
 0x1f5   : > { %831 = vmatpush.bf16.msra.mxu2 %v1137_v45 }
 0x1f6   : > { %v1073_v46 = vmul.f32 -1.442695, %v575_v17 }
 0x1f8   : > { %1288 = vpow2.f32 %v1073_v46 }
 0x1fb   : > { %v576_v47 = vpop.f32.mrf.mxu1  ;;  %v558_v33 = vpop.f32.mrf.mxu0 }
 0x1fc   : > { %v577_v48 = vadd.f32 %v576_v47, %v464_v12  ;;  %v559_v38 = vadd.f32 %v558_v33, %v1864_v7 }
 0x1fe   : > { %v1289_v49 = vpop.eup %1288  ;;  %v1074_v50 = vmul.f32 -1.442695, %v577_v48 }
 0x1ff   : > { %v592_v51 = vadd.f32 1.0, %v1289_v49  ;;  %v674_v49 = vld [vmem:[#allocation10] sm:$0x1f] }
 0x200   : > { %1290 = vpow2.f32 %v1074_v50  ;;  %v677_v55 = vperm.slane %v674_v49, 0 }
 0x201   : > { %1292 = vrcp.f32 %v592_v51  ;;  %v1857_v52 = vpop.f32.mrf.mxu3  ;;  %v606_v4 = vand.u32 2147483648, %v592_v51  ;;  %v604_v10 = vand.u32 2147483647, %v592_v51  ;;  %vm600_vm11 = vweird.f32 %v592_v51 }
 0x202   : > { %v562_v20 = vadd.f32 %v1857_v52, %v1864_v7  ;;  %v705_v52 = vperm.slane %v674_v49, 4 }
 0x203   : > { %v579_v53 = vpop.f32.mrf.mxu1  ;;  %v607_v16 = vor.u32 1.1754944e-38, %v606_v4  ;;  %vm605_vm15 = vcmp.eq.f32.partialorder %v604_v10, 8.507059e+37  ;;  %v1278_v10 = vld [vmem:[%s1931_s4] ss:$0 sm:$0xff] }
 0x204   : > { %v580_v54 = vadd.f32 %v579_v53, %v464_v12 }
 0x206   : > { %v1291_v56 = vpop.eup %1290  ;;  %v1075_v58 = vmul.f32 -1.442695, %v580_v54 }
 0x207   : > { %v1293_v59 = vpop.eup %1292  ;;  %v593_v61 = vadd.f32 1.0, %v1291_v56  ;;  %v684_v56 = vperm.slane %v674_v49, 1 }
 0x208   : > { %v596_v63 = vmul.f32 %v1293_v59, %v592_v51  ;;  %1294 = vpow2.f32 %v1075_v58  ;;  %vm601_vm10 = vweird.f32 %v1293_v59  ;;  %v1136_v51 = vld [vmem:[#allocation11] sm:$0xff]  ;;  %v691_v58 = vperm.slane %v674_v49, 2 }
 0x209   : > { %1296 = vrcp.f32 %v593_v61  ;;  %v563_v0 = vpop.f32.mrf.mxu3  ;;  %vm602_vm14 = vmor %vm600_vm11, %vm601_vm10  ;;  %v621_v28 = vand.u32 2147483648, %v593_v61  ;;  %v619_v32 = vand.u32 2147483647, %v593_v61  ;;  %vm615_vm3 = vweird.f32 %v593_v61  ;;  %832 = vmatpush.bf16.msra.mxu2 %v1136_v51 }
 0x20a   : > { %v597_v1 = vsub.f32 1.0, %v596_v63  ;;  %vm655_vm10 = vcmp.ge.s32.totalorder %v652_v44, 0  ;;  %vm658_vm11 = vcmp.lt.s32.totalorder %v652_v44, 64  ;;  %v698_v0 = vperm.slane %v674_v49, 3 }
 0x20b   : > { %v581_v5 = vpop.f32.mrf.mxu1  ;;  %v622_v36 = vor.u32 1.1754944e-38, %v621_v28  ;;  %vm620_vm6 = vcmp.eq.f32.partialorder %v619_v32, 8.507059e+37 }
 0x20c   : > { %v598_v8 = vmul.f32 %v1293_v59, %v597_v1 }
 0x20e   : > { %v1295_v13 = vpop.eup %1294  ;;  %v599_v14 = vadd.f32 %v1293_v59, %v598_v8 }
 0x20f   : > { %v1297_v15 = vpop.eup %1296  ;;  %v594_v18 = vadd.f32 1.0, %v1295_v13 }
 0x210   : > { %v603_v22 = vsel %vm602_vm14, %v1293_v59, %v599_v14  ;;  %v611_v23 = vmul.f32 %v1297_v15, %v593_v61  ;;  %vm616_vm1 = vweird.f32 %v1297_v15  ;;  %vm661_vm14 = vmand %vm655_vm10, %vm658_vm11 }
 0x211   : > { %v608_v24 = vsel %vm605_vm15, %v607_v16, %v603_v22  ;;  %1298 = vrcp.f32 %v594_v18  ;;  %vm617_vm5 = vmor %vm615_vm3, %vm616_vm1  ;;  %v636_v12 = vand.u32 2147483648, %v594_v18  ;;  %v634_v47 = vand.u32 2147483647, %v594_v18 }
 0x212   : > { %v640_v26 = vmul.f32 %v608_v24, %v557_v21  ;;  %v612_v27 = vsub.f32 1.0, %v611_v23  ;;  %vm630_vm9 = vweird.f32 %v594_v18 }
 0x213   : > { %v637_v50 = vor.u32 1.1754944e-38, %v636_v12  ;;  %vm635_vm13 = vcmp.eq.f32.partialorder %v634_v47, 8.507059e+37 }
 0x214   : > { %v668_v30 = vsel %vm659_vm0, %v640_v26, 0.0  ;;  %v613_v31 = vmul.f32 %v1297_v15, %v612_v27 }
 0x215   : > { %671 = vst [vmem:[#allocation4] sm:$0xff] %v668_v30  ;;  %v678_v62 = vmul.f32 %v677_v55, %v668_v30 }
 0x216   : > { %v614_v9 = vadd.f32 %v1297_v15, %v613_v31 }
 0x217   : > { %v1299_v35 = vpop.eup %1298 }
 0x218   : > { %v618_v39 = vsel %vm617_vm5, %v1297_v15, %v614_v9  ;;  %v626_v40 = vmul.f32 %v1299_v35, %v594_v18  ;;  %vm631_vm8 = vweird.f32 %v1299_v35 }
 0x219   : > { %v623_v41 = vsel %vm620_vm6, %v622_v36, %v618_v39  ;;  %vm632_vm12 = vmor %vm630_vm9, %vm631_vm8 }
 0x21a   : > { %v641_v42 = vmul.f32 %v623_v41, %v559_v38  ;;  %v627_v43 = vsub.f32 1.0, %v626_v40 }
 0x21c   : > { %v669_v17 = vsel %vm660_vm7, %v641_v42, 0.0  ;;  %v628_v46 = vmul.f32 %v1299_v35, %v627_v43 }
 0x21d   : > { %672 = vst [vmem:[#allocation4 + $0x8] sm:$0xff] %v669_v17  ;;  %v679_v14 = vmul.f32 %v677_v55, %v669_v17 }
 0x21e   : > { %v629_v48 = vadd.f32 %v1299_v35, %v628_v46 }
 0x220   : > { %v633_v53 = vsel %vm632_vm12, %v1299_v35, %v629_v48 }
 0x221   : > { %v638_v54 = vsel %vm635_vm13, %v637_v50, %v633_v53 }
 0x222   : > { %v642_v57 = vmul.f32 %v638_v54, %v562_v20 }
 0x224   : > { %v670_v59 = vsel %vm661_vm14, %v642_v57, 0.0  ;;  %v682_v60 = vld [vmem:[#allocation4 + $0x1] sm:$0xff] }
 0x225   : > { %v689_v61 = vld [vmem:[#allocation4 + $0x2] sm:$0xff]  ;;  %673 = vst [vmem:[#allocation4 + $0x10] sm:$0xff] %v670_v59  ;;  %v685_v63 = vmul.f32 %v684_v56, %v682_v60 }
 0x226   : > { %v696_v1 = vld [vmem:[#allocation4 + $0x3] sm:$0xff]  ;;  %v692_v3 = vmul.f32 %v691_v58, %v689_v61 }
 0x227   : > { %v687_v2 = vadd.f32 %v685_v63, %v678_v62  ;;  %v703_v4 = vld [vmem:[#allocation4 + $0x4] sm:$0xff]  ;;  %v699_v6 = vmul.f32 %v698_v0, %v696_v1 }
 0x228   : > { %v706_v8 = vmul.f32 %v705_v52, %v703_v4 }
 0x229   : > { %v694_v5 = vadd.f32 %v692_v3, %v687_v2 }
 0x22b   : > { %v701_v7 = vadd.f32 %v699_v6, %v694_v5 }
 0x22c   : > { %v683_v11 = vld [vmem:[#allocation4 + $0x9] sm:$0xff] }
 0x22d   : > { %v690_v13 = vld [vmem:[#allocation4 + $0xa] sm:$0xff]  ;;  %v686_v15 = vmul.f32 %v684_v56, %v683_v11  ;;  %v708_v16 = vadd.f32 %v706_v8, %v701_v7 }
 0x22e   : > { %v697_v18 = vld [vmem:[#allocation4 + $0xb] sm:$0xff]  ;;  %v693_v21 = vmul.f32 %v691_v58, %v690_v13 }
 0x22f   : > { %v688_v19 = vadd.f32 %v686_v15, %v679_v14  ;;  %v714_v22 = vadd.f32 %v1278_v10, %v708_v16  ;;  %v704_v23 = vld [vmem:[#allocation4 + $0xc] sm:$0xff]  ;;  %v700_v25 = vmul.f32 %v698_v0, %v697_v18 }
 0x230   : > { %v707_v28 = vmul.f32 %v705_v52, %v704_v23  ;;  %v1279_v56 = vld [vmem:[%s1933_s6] ss:$0 sm:$0xff] }
 0x231   : > { %v695_v24 = vadd.f32 %v693_v21, %v688_v19  ;;  %v1078_v26 = vmul.f32 -1.442695, %v714_v22 }
 0x233   : > { %v702_v27 = vadd.f32 %v700_v25, %v695_v24  ;;  %1300 = vpow2.f32 %v1078_v26 }
 0x235   : > { %v709_v29 = vadd.f32 %v707_v28, %v702_v27 }
 0x237   : > { %v715_v30 = vadd.f32 %v1278_v10, %v709_v29 }
 0x239   : > { %v1301_v31 = vpop.eup %1300  ;;  %v1079_v32 = vmul.f32 -1.442695, %v715_v30 }
 0x23a   : > { %v722_v33 = vadd.f32 1.0, %v1301_v31 }
 0x23b   : > { %1302 = vpow2.f32 %v1079_v32 }
 0x23c   : > { %1304 = vrcp.f32 %v722_v33  ;;  %v735_v42 = vand.u32 2147483648, %v722_v33  ;;  %vm729_vm0 = vweird.f32 %v722_v33  ;;  %v733_v43 = vand.u32 2147483647, %v722_v33 }
 0x23e   : > { %v736_v47 = vor.u32 1.1754944e-38, %v735_v42  ;;  %vm734_vm3 = vcmp.eq.f32.partialorder %v733_v43, 8.507059e+37 }
 0x241   : > { %v1303_v9 = vpop.eup %1302 }
 0x242   : > { %v1305_v34 = vpop.eup %1304  ;;  %v723_v35 = vadd.f32 1.0, %v1303_v9 }
 0x243   : > { %v725_v36 = vmul.f32 %v1305_v34, %v722_v33  ;;  %vm730_vm15 = vweird.f32 %v1305_v34 }
 0x244   : > { %1306 = vrcp.f32 %v723_v35  ;;  %vm731_vm1 = vmor %vm729_vm0, %vm730_vm15  ;;  %v750_v12 = vand.u32 2147483648, %v723_v35  ;;  %v748_v46 = vand.u32 2147483647, %v723_v35  ;;  %vm744_vm4 = vweird.f32 %v723_v35 }
 0x245   : > { %v726_v37 = vsub.f32 1.0, %v725_v36 }
 0x246   : > { %v751_v50 = vor.u32 1.1754944e-38, %v750_v12  ;;  %vm749_vm6 = vcmp.eq.f32.partialorder %v748_v46, 8.507059e+37 }
 0x247   : > { %v727_v38 = vmul.f32 %v1305_v34, %v726_v37 }
 0x249   : > { %v728_v40 = vadd.f32 %v1305_v34, %v727_v38 }
 0x24a   : > { %v1307_v39 = vpop.eup %1306 }
 0x24b   : > { %v740_v41 = vmul.f32 %v1307_v39, %v723_v35  ;;  %v732_v45 = vsel %vm731_vm1, %v1305_v34, %v728_v40  ;;  %vm745_vm2 = vweird.f32 %v1307_v39 }
 0x24c   : > { %v737_v49 = vsel %vm734_vm3, %v736_v47, %v732_v45  ;;  %vm746_vm5 = vmor %vm744_vm4, %vm745_vm2 }
 0x24d   : > { %v741_v44 = vsub.f32 1.0, %v740_v41  ;;  %v754_v53 = vmul.f32 %v737_v49, %v714_v22 }
 0x24f   : > { %v742_v17 = vmul.f32 %v1307_v39, %v741_v44 }
 0x251   : > { %v743_v48 = vadd.f32 %v1307_v39, %v742_v17 }
 0x253   : > { %v747_v51 = vsel %vm746_vm5, %v1307_v39, %v743_v48 }
 0x254   : > { %v752_v20 = vsel %vm749_vm6, %v751_v50, %v747_v51 }
 0x255   : > { %v755_v54 = vmul.f32 %v752_v20, %v715_v30 }
 0x257   : > { %v756_v55 = vpack.c.bf16 %v755_v54, %v754_v53 }
 0x259   : > { %833 = vmatmul.bf16.vlgmr.msra.gmra.mxu2 %v756_v55 }
 0x2dc   : > { %v834_v57 = vpop.f32.mrf.mxu2 }
 0x2dd   : > { %v835_v58 = vadd.f32 %v1279_v56, %v834_v57 }
 0x2df   : > { %839 = vst [vmem:[%s1829_s2] sm:$0xff] %v835_v58 }
 0x2e4   : > { %v836_v59 = vpop.f32.mrf.mxu2 }
 0x2e5   : > { %v837_v60 = vadd.f32 %v1279_v56, %v836_v59 }
 0x2e7   : > { %840 = vst [vmem:[%s1829_s2 + $0x8] sm:$0xff] %v837_v60 }
 0x2e8   : > { %1511 = shalt.err (!%p1508_p7)
}
 0x2e9   : > { %s1604_s2 = smov 128   ;;  %s1605_s17 = smov 8  }
 0x2ea   : > { %1172 = dma.vmem_to_hbm [thread:$0]  (%p1698_p3), %s857_s9, 256, %s859_s11, %s842_s28, %s1604_s2, %s1604_s2, %s1605_s17  }
 0x2eb PF: > { %p1201_p9 = scmp.ge.s32.totalorder %s1592_s8, 2  ;;  %s873_s10 = sand.u32 1, %s1564_s24  }
 0x2ec   : > { %p1959_p10 = scmp.ne.s32.totalorder %s1948_s16, 0  ;;  %s874_s12 = scalar_lea.sflag [#allocation7], %s873_s10 }
 0x2ee   : > { %p1188_p11 = pnand %p1201_p9, %p1959_p10 }
 0x2f0   : > { %p1189_p12 = pneg %p1188_p11 }
 0x2f2   : > { %1559 = dma.done.wait (%p1189_p12), %s874_s12, 256  }
 0x2f3   : > { %1561 = vsyncadd (%p1189_p12), %s874_s12, 4294967040  ;;  %s23_s8 = sadd.s32 1, %s1592_s8   ;;  %s1960_s21 = sld [smem:[#allocation29_spill]] }
 0x2f4   : > { %p20_p0 = scmp.ge.s32.totalorder %s23_s8, 10   ;;  %s1961_s27 = sld [smem:[#allocation25_spill]] }
 0x2f5   : > { %s1962_s28 = sld [smem:[#allocation26_spill]]  ;;  %s1965_s24 = smov %s1568_s25 }
 0x2f6   : > { %s1963_s29 = sld [smem:[#allocation27_spill]]  ;;  %s1966_s25 = smov %s1572_s26 }
 0x2f7   : > { %s1964_s30 = sld [smem:[#allocation28_spill]]  ;;  %22 = sbr.rel (!%p20_p0) target bundleno = 11 (0xb), region = 116 }
 0x2f9   : > { %s1967_s26 = smov %s1960_s21 }
 0x2fc   :  { %880 = vsyncpa [#allocation6], 1 }
 0x2fd   :  { %882 = vsyncpa [#allocation6 + $0x1], 1 }
 0x2fe   :  { %883 = vsyncpa [#allocation9], 1 }
 0x2ff   :  { %884 = vsyncpa [#allocation12], 1 }
 0x300   :  { %885 = vsyncpa [#allocation7], 1 }
 0x301   :  { %887 = vsyncpa [#allocation7 + $0x1], 1 }
 0x302   :  { %888 = vsyncmov [#allocation3] }
 0x305   :  { %s889_s15 = vpop.sfrf %888 }
 0x306   :  { %p1118_p3 = scmp.ne.s32.totalorder %s889_s15, 0 }
 0x308   :  { %893 = shalt.err (%p1118_p3)  }
 0x309   :  { %895 = vsyncmov [#allocation3 + $0x1] }
 0x30c   :  { %s896_s16 = vpop.sfrf %895 }
 0x30d   :  { %p1119_p1 = scmp.ne.s32.totalorder %s896_s16, 0 }
 0x30f   :  { %900 = shalt.err (%p1119_p1)  }

</bundles_post_ra>
